<compile_context>
chip_gen: v5e
topology: v5e:2x2
jax: 0.10.0
libtpu: 0.0.40
codegen_flags: <defaults>
</compile_context>

<pallas_src>
import functools

import jax
import jax.numpy as jnp
from jax.experimental import pallas as pl
from jax.experimental.pallas import tpu as pltpu


def residual_kernel(x_ref, w1_ref, b1_ref, w2_ref, b2_ref, w3_ref, wd_ref,
                    b3_ref, o_ref, *, H, W):
    """One image per grid step.  Activations are (H*W pixels, channels) slabs.

    x_ref  : (1, H*W, Cin)  bf16
    w1_ref : (Cin, Cb) bf16 , b1_ref : (1, Cb) f32     1x1 conv + BN
    w2_ref : (9, Cb, Cb) bf16, b2_ref : (1, Cb) f32    3x3 conv + BN
    w3_ref : (Cb, Cout) bf16                           final 1x1 conv + BN
    wd_ref : (Cin, Cout) bf16                          downsample 1x1(+bias)+BN
    b3_ref : (1, Cout) f32                             fused sh3 + shd
    o_ref  : (1, H*W, Cout) f32                        lane-dense output slab
    """
    x = x_ref[0]                                        # (P, Cin) bf16
    P = H * W
    Cb = w1_ref.shape[1]

    # ---- 1x1 conv -> BN -> ReLU : one compact matmul ----
    y1 = jnp.dot(x, w1_ref[...], preferred_element_type=jnp.float32)
    y1 = jnp.maximum(y1 + b1_ref[...], 0.0)             # (P, Cb) f32

    # ---- 3x3 conv (pad=1, stride=1) -> BN -> ReLU ----
    # tap(dh,dw)[p=(h,w)] = y1[h+dh, w+dw]  (zero outside the image).
    # A row-linear shift by s = dh*W + dw handles the h boundary via zero
    # fill; the w wrap-around is removed by masking the SOURCE columns once
    # per dw sign (hoisted out of the 9-tap loop): dw=+1 wraps through
    # w_src == 0, dw=-1 wraps through w_src == W-1.
    w_idx = jax.lax.broadcasted_iota(jnp.int32, (P, 1), 0) % W
    y1_dwp = jnp.where(w_idx > 0, y1, 0.0)               # sources for dw = +1
    y1_dwm = jnp.where(w_idx < W - 1, y1, 0.0)           # sources for dw = -1
    src_by_dw = {-1: y1_dwm, 0: y1, 1: y1_dwp}

    def row_shift(v, s):        # out[p] = v[p + s], zero fill outside [0, P)
        if s == 0:
            return v
        if s > 0:
            return jnp.concatenate([v[s:, :], jnp.zeros((s, Cb), v.dtype)], 0)
        return jnp.concatenate([jnp.zeros((-s, Cb), v.dtype), v[:s, :]], 0)

    acc = jnp.zeros((P, Cb), jnp.float32)
    for k in range(9):          # 9 accumulating compact matmuls (MXU / MRB)
        dh, dw = k // 3 - 1, k % 3 - 1
        tap = row_shift(src_by_dw[dw], dh * W + dw)
        acc = acc + jnp.dot(tap.astype(jnp.bfloat16), w2_ref[k],
                            preferred_element_type=jnp.float32)
    y2 = jnp.maximum(acc + b2_ref[...], 0.0)              # (P, Cb) f32

    # ---- final 1x1 conv+BN  +  downsample 1x1(+bias)+BN, add, ReLU ----
    out = jnp.dot(y2.astype(jnp.bfloat16), w3_ref[...],
                  preferred_element_type=jnp.float32)
    out = out + jnp.dot(x, wd_ref[...], preferred_element_type=jnp.float32)
    out = jnp.maximum(out + b3_ref[...], 0.0)              # (P, Cout) f32
    o_ref[0] = out.astype(o_ref.dtype)


@jax.jit
def residual_forward(x_nchw, w1, b1, w2, b2, w3, wd, b3):
    N, Cin, H, W = x_nchw.shape
    Cb = w1.shape[1]
    Cout = w3.shape[1]
    P = H * W

    # NCHW -> (N, H*W, Cin): pixels on sublanes, channels on lanes.  Cast the
    # activations to bf16 once at the kernel boundary (MXU inputs); all
    # accumulation / bias / ReLU stays f32 in-kernel.
    x = jnp.transpose(x_nchw, (0, 2, 3, 1)).reshape(N, P, Cin)
    x = x.astype(jnp.bfloat16)

    kernel = functools.partial(residual_kernel, H=H, W=W)
    out = pl.pallas_call(
        kernel,
        out_shape=jax.ShapeDtypeStruct((N, P, Cout), jnp.float32),
        grid_spec=pltpu.PrefetchScalarGridSpec(
            num_scalar_prefetch=0,
            grid=(N,),
            in_specs=[
                pl.BlockSpec((1, P, Cin), lambda n: (n, 0, 0)),
                pl.BlockSpec((Cin, Cb), lambda n: (0, 0)),
                pl.BlockSpec((1, Cb), lambda n: (0, 0)),
                pl.BlockSpec((9, Cb, Cb), lambda n: (0, 0, 0)),
                pl.BlockSpec((1, Cb), lambda n: (0, 0)),
                pl.BlockSpec((Cb, Cout), lambda n: (0, 0)),
                pl.BlockSpec((Cin, Cout), lambda n: (0, 0)),
                pl.BlockSpec((1, Cout), lambda n: (0, 0)),
            ],
            out_specs=pl.BlockSpec((1, P, Cout), lambda n: (n, 0, 0)),
        ),
        compiler_params=pltpu.CompilerParams(
            dimension_semantics=("parallel",)),   # one image per TC on v7x
    )(x, w1, b1, w2, b2, w3, wd, b3)

    return jnp.transpose(out.reshape(N, H, W, Cout), (0, 3, 1, 2))


# ----------------------------- parameter setup ------------------------------

def bn_fold(key, C, eps=1e-5):
    """Deterministic synthetic BN params -> folded (scale, shift), eval mode."""
    k1, k2, k3, k4 = jax.random.split(key, 4)
    gamma = jax.random.uniform(k1, (C,), minval=0.5, maxval=1.5)
    beta = jax.random.normal(k2, (C,)) * 0.1
    mean = jax.random.normal(k3, (C,)) * 0.1
    var = jax.random.uniform(k4, (C,), minval=0.5, maxval=1.5)
    scale = gamma / jnp.sqrt(var + eps)
    shift = beta - mean * scale
    return scale, shift


def make_params(key, in_channel, out_channel, bottleneck_channel=None):
    """Compact folded (conv+BN) weights in f32.  Done once, outside the jit."""
    Cb = in_channel // 2 if bottleneck_channel is None else bottleneck_channel
    ks = jax.random.split(key, 9)
    w1 = jax.random.normal(ks[0], (in_channel, Cb)) * 0.2            # 1x1, (Ci,Co)
    w2 = jax.random.normal(ks[1], (3, 3, Cb, Cb)) * 0.2              # 3x3, HWIO
    w3 = jax.random.normal(ks[2], (Cb, out_channel)) * 0.2           # 1x1
    wd = jax.random.normal(ks[3], (in_channel, out_channel)) * 0.2   # downsample
    bd = jax.random.normal(ks[4], (out_channel,)) * 0.1              # downsample bias

    s1, sh1 = bn_fold(ks[5], Cb)
    s2, sh2 = bn_fold(ks[6], Cb)
    s3, sh3 = bn_fold(ks[7], out_channel)
    sd, shd_nobias = bn_fold(ks[8], out_channel)
    shd = bd * sd + shd_nobias                     # fold conv bias through BN

    w1f = w1 * s1[None, :]
    w2f = (w2 * s2[None, None, None, :]).reshape(9, Cb, Cb)
    w3f = w3 * s3[None, :]
    wdf = wd * sd[None, :]
    b3 = (sh3 + shd).reshape(1, out_channel)       # fused final + downsample bias
    return (w1f, sh1.reshape(1, Cb), w2f, sh2.reshape(1, Cb), w3f, wdf, b3)


def as_kernel_params(params_f32):
    """Cast matmul weights to bf16 once (kept out of the per-call forward)."""
    w1f, sh1, w2f, sh2, w3f, wdf, b3 = params_f32
    bf = jnp.bfloat16
    return (w1f.astype(bf), sh1, w2f.astype(bf), sh2,
            w3f.astype(bf), wdf.astype(bf), b3)


# ----------------------------- pure-JAX reference ---------------------------

def reference_forward(x_nchw, w1f, sh1, w2f, sh2, w3f, wdf, b3,
                      matmul_dtype=jnp.float32):
    """Module semantics.  matmul_dtype=bf16 reproduces the kernel's MXU path."""
    def mm(t, w):
        return jnp.einsum('nhwc,cd->nhwd', t.astype(matmul_dtype),
                          w.astype(matmul_dtype),
                          preferred_element_type=jnp.float32)

    x = jnp.transpose(x_nchw, (0, 2, 3, 1)).astype(jnp.float32)   # NHWC
    N, H, W, _ = x.shape
    y1 = jnp.maximum(mm(x, w1f) + sh1[0], 0.0)
    xp = jnp.pad(y1, ((0, 0), (1, 1), (1, 1), (0, 0)))
    acc = jnp.zeros((N, H, W, w2f.shape[-1]), jnp.float32)
    for k in range(9):
        di, dj = k // 3, k % 3
        acc = acc + mm(xp[:, di:di + H, dj:dj + W, :], w2f[k])
    y2 = jnp.maximum(acc + sh2[0], 0.0)
    out = mm(y2, w3f) + mm(x, wdf) + b3[0]
    out = jnp.maximum(out, 0.0)
    return jnp.transpose(out, (0, 3, 1, 2))


if __name__ == "__main__":
    # Small shapes consistent with the module (stride=1, bottleneck = in//2).
    # Cout = 128 lanes -> the output slab store is fully lane-dense.
    N, Cin, H, W = 2, 64, 8, 8
    Cout = 128
    stride = 1
    assert stride == 1  # TODO(synk): stride > 1 not implemented in-kernel.

    key = jax.random.PRNGKey(0)
    kx, kp = jax.random.split(key)
    x = jax.random.normal(kx, (N, Cin, H, W), dtype=jnp.float32)   # NCHW input

    params_f32 = make_params(kp, Cin, Cout)      # f32 folded weights (reference)
    kparams = as_kernel_params(params_f32)       # bf16 weights / f32 biases

    out = residual_forward(x, *kparams)
    out = jax.block_until_ready(out)
    assert out.shape == (N, Cout, H, W), out.shape

    # Tight structural check against a reference with the same bf16 MXU inputs
    # and f32 accumulation.
    ref_bf16 = reference_forward(x, *params_f32, matmul_dtype=jnp.bfloat16)
    assert jnp.allclose(out, ref_bf16, rtol=1e-2, atol=1e-2), \
        float(jnp.max(jnp.abs(out - ref_bf16)))

    # Loose sanity check against the exact f32 module semantics (tolerance
    # reflects bf16 matmul inputs).
    ref_f32 = reference_forward(x, *params_f32, matmul_dtype=jnp.float32)
    assert jnp.allclose(out, ref_f32, rtol=0.1, atol=0.5), \
        float(jnp.max(jnp.abs(out - ref_f32)))

    print("KERNEL_OK")
</pallas_src>

<mosaic_0001>
module attributes {stable_mosaic.version = 11 : i64} {
  func.func @residual_kernel(%arg0: i32, %arg1: memref<1x64x64xbf16, #tpu.memory_space<vmem>>, %arg2: memref<64x32xbf16, #tpu.memory_space<vmem>>, %arg3: memref<1x32xf32, #tpu.memory_space<vmem>>, %arg4: memref<9x32x32xbf16, #tpu.memory_space<vmem>>, %arg5: memref<1x32xf32, #tpu.memory_space<vmem>>, %arg6: memref<32x128xbf16, #tpu.memory_space<vmem>>, %arg7: memref<64x128xbf16, #tpu.memory_space<vmem>>, %arg8: memref<1x128xf32, #tpu.memory_space<vmem>>, %arg9: memref<1x64x128xf32, #tpu.memory_space<vmem>>) attributes {dimension_semantics = [#tpu.dimension_semantics<parallel>], iteration_bounds = array<i64: 2>, scalar_prefetch = 0 : i64, scratch_operands = 0 : i64, tpu.core_type = #tpu.core_type<tc>, window_params = [{transform_indices = @transform_0, window_bounds = array<i64: 1, 64, 64>}, {pipeline_mode = #tpu.pipeline_mode<synchronous>, transform_indices = @transform_1, window_bounds = array<i64: 64, 32>}, {pipeline_mode = #tpu.pipeline_mode<synchronous>, transform_indices = @transform_2, window_bounds = array<i64: 1, 32>}, {pipeline_mode = #tpu.pipeline_mode<synchronous>, transform_indices = @transform_3, window_bounds = array<i64: 9, 32, 32>}, {pipeline_mode = #tpu.pipeline_mode<synchronous>, transform_indices = @transform_4, window_bounds = array<i64: 1, 32>}, {pipeline_mode = #tpu.pipeline_mode<synchronous>, transform_indices = @transform_5, window_bounds = array<i64: 32, 128>}, {pipeline_mode = #tpu.pipeline_mode<synchronous>, transform_indices = @transform_6, window_bounds = array<i64: 64, 128>}, {pipeline_mode = #tpu.pipeline_mode<synchronous>, transform_indices = @transform_7, window_bounds = array<i64: 1, 128>}, {transform_indices = @transform_8, window_bounds = array<i64: 1, 64, 128>}]} {
    %c0 = arith.constant 0 : index
    %c0_0 = arith.constant 0 : index
    %c0_1 = arith.constant 0 : index
    %0 = vector.load %arg1[%c0, %c0_0, %c0_1] : memref<1x64x64xbf16, #tpu.memory_space<vmem>>, vector<1x64x64xbf16>
    %1 = vector.shape_cast %0 : vector<1x64x64xbf16> to vector<64x64xbf16>
    %c0_2 = arith.constant 0 : index
    %c0_3 = arith.constant 0 : index
    %2 = vector.load %arg2[%c0_2, %c0_3] : memref<64x32xbf16, #tpu.memory_space<vmem>>, vector<64x32xbf16>
    %cst = arith.constant dense<0.000000e+00> : vector<64x32xf32>
    %3 = tpu.matmul %1, %2, %cst {dimension_numbers = #tpu.dot_dimension_numbers<[1], [0], [0], [1], [0, 0, 1, 1], [], []>} : vector<64x64xbf16>, vector<64x32xbf16>, vector<64x32xf32> -> vector<64x32xf32>
    %c0_4 = arith.constant 0 : index
    %c0_5 = arith.constant 0 : index
    %4 = vector.load %arg3[%c0_4, %c0_5] : memref<1x32xf32, #tpu.memory_space<vmem>>, vector<1x32xf32>
    %5 = vector.broadcast %4 : vector<1x32xf32> to vector<64x32xf32>
    %6 = arith.addf %3, %5 : vector<64x32xf32>
    %cst_6 = arith.constant 0.000000e+00 : f32
    %7 = vector.broadcast %cst_6 : f32 to vector<64x32xf32>
    %8 = arith.maximumf %6, %7 : vector<64x32xf32>
    %9 = tpu.iota {dimensions = array<i32: 0>} : vector<64x1xi32>
    %c8_i32 = arith.constant 8 : i32
    %c0_i32 = arith.constant 0 : i32
    %10 = arith.cmpi eq, %c8_i32, %c0_i32 : i32
    %c1_i32 = arith.constant 1 : i32
    %11 = arith.select %10, %c1_i32, %c8_i32 : i32
    %12 = vector.broadcast %11 : i32 to vector<64x1xi32>
    %13 = arith.remsi %9, %12 : vector<64x1xi32>
    %c0_i32_7 = arith.constant 0 : i32
    %14 = vector.broadcast %c0_i32_7 : i32 to vector<64x1xi32>
    %15 = arith.cmpi ne, %13, %14 : vector<64x1xi32>
    %c0_i32_8 = arith.constant 0 : i32
    %16 = vector.broadcast %c0_i32_8 : i32 to vector<64x1xi32>
    %17 = arith.cmpi slt, %13, %16 : vector<64x1xi32>
    %c0_i32_9 = arith.constant 0 : i32
    %18 = arith.cmpi slt, %11, %c0_i32_9 : i32
    %19 = vector.broadcast %18 : i1 to vector<64x1xi1>
    %20 = vector.broadcast %19 : vector<64x1xi1> to vector<64x1xi1>
    %21 = arith.xori %17, %20 : vector<64x1xi1>
    %22 = arith.andi %21, %15 : vector<64x1xi1>
    %23 = vector.broadcast %11 : i32 to vector<64x1xi32>
    %24 = arith.addi %13, %23 : vector<64x1xi32>
    %25 = arith.select %22, %24, %13 : vector<64x1xi1>, vector<64x1xi32>
    %c0_i32_10 = arith.constant 0 : i32
    %26 = vector.broadcast %c0_i32_10 : i32 to vector<64x1xi32>
    %27 = arith.cmpi sgt, %25, %26 : vector<64x1xi32>
    %cst_11 = arith.constant 0.000000e+00 : f32
    %28 = vector.shape_cast %27 : vector<64x1xi1> to vector<64x1xi1>
    %29 = vector.broadcast %28 : vector<64x1xi1> to vector<64x32xi1>
    %30 = vector.broadcast %cst_11 : f32 to vector<64x32xf32>
    %31 = arith.select %29, %8, %30 : vector<64x32xi1>, vector<64x32xf32>
    %c7_i32 = arith.constant 7 : i32
    %32 = vector.broadcast %c7_i32 : i32 to vector<64x1xi32>
    %33 = arith.cmpi slt, %25, %32 : vector<64x1xi32>
    %cst_12 = arith.constant 0.000000e+00 : f32
    %34 = vector.shape_cast %33 : vector<64x1xi1> to vector<64x1xi1>
    %35 = vector.broadcast %34 : vector<64x1xi1> to vector<64x32xi1>
    %36 = vector.broadcast %cst_12 : f32 to vector<64x32xf32>
    %37 = arith.select %35, %8, %36 : vector<64x32xi1>, vector<64x32xf32>
    %cst_13 = arith.constant 0.000000e+00 : f32
    %38 = vector.broadcast %cst_13 : f32 to vector<64x32xf32>
    %cst_14 = arith.constant 0.000000e+00 : f32
    %39 = vector.broadcast %cst_14 : f32 to vector<9x32xf32>
    %40 = vector.extract_strided_slice %37 {offsets = [0, 0], sizes = [55, 32], strides = [1, 1]} : vector<64x32xf32> to vector<55x32xf32>
    %41 = tpu.concatenate %39, %40 in 0 : vector<9x32xf32>, vector<55x32xf32> -> vector<64x32xf32>
    %42 = arith.truncf %41 : vector<64x32xf32> to vector<64x32xbf16>
    %c0_15 = arith.constant 0 : index
    %c0_16 = arith.constant 0 : index
    %c0_17 = arith.constant 0 : index
    %43 = vector.load %arg4[%c0_15, %c0_16, %c0_17] : memref<9x32x32xbf16, #tpu.memory_space<vmem>>, vector<1x32x32xbf16>
    %44 = vector.shape_cast %43 : vector<1x32x32xbf16> to vector<32x32xbf16>
    %cst_18 = arith.constant dense<0.000000e+00> : vector<64x32xf32>
    %45 = tpu.matmul %42, %44, %cst_18 {dimension_numbers = #tpu.dot_dimension_numbers<[1], [0], [0], [1], [0, 0, 1, 1], [], []>} : vector<64x32xbf16>, vector<32x32xbf16>, vector<64x32xf32> -> vector<64x32xf32>
    %46 = arith.addf %38, %45 : vector<64x32xf32>
    %cst_19 = arith.constant 0.000000e+00 : f32
    %47 = vector.broadcast %cst_19 : f32 to vector<8x32xf32>
    %48 = vector.extract_strided_slice %8 {offsets = [0, 0], sizes = [56, 32], strides = [1, 1]} : vector<64x32xf32> to vector<56x32xf32>
    %49 = tpu.concatenate %47, %48 in 0 : vector<8x32xf32>, vector<56x32xf32> -> vector<64x32xf32>
    %50 = arith.truncf %49 : vector<64x32xf32> to vector<64x32xbf16>
    %c1 = arith.constant 1 : index
    %c0_20 = arith.constant 0 : index
    %c0_21 = arith.constant 0 : index
    %51 = vector.load %arg4[%c1, %c0_20, %c0_21] : memref<9x32x32xbf16, #tpu.memory_space<vmem>>, vector<1x32x32xbf16>
    %52 = vector.shape_cast %51 : vector<1x32x32xbf16> to vector<32x32xbf16>
    %cst_22 = arith.constant dense<0.000000e+00> : vector<64x32xf32>
    %53 = tpu.matmul %50, %52, %cst_22 {dimension_numbers = #tpu.dot_dimension_numbers<[1], [0], [0], [1], [0, 0, 1, 1], [], []>} : vector<64x32xbf16>, vector<32x32xbf16>, vector<64x32xf32> -> vector<64x32xf32>
    %54 = arith.addf %46, %53 : vector<64x32xf32>
    %cst_23 = arith.constant 0.000000e+00 : f32
    %55 = vector.broadcast %cst_23 : f32 to vector<7x32xf32>
    %56 = vector.extract_strided_slice %31 {offsets = [0, 0], sizes = [57, 32], strides = [1, 1]} : vector<64x32xf32> to vector<57x32xf32>
    %57 = tpu.concatenate %55, %56 in 0 : vector<7x32xf32>, vector<57x32xf32> -> vector<64x32xf32>
    %58 = arith.truncf %57 : vector<64x32xf32> to vector<64x32xbf16>
    %c2 = arith.constant 2 : index
    %c0_24 = arith.constant 0 : index
    %c0_25 = arith.constant 0 : index
    %59 = vector.load %arg4[%c2, %c0_24, %c0_25] : memref<9x32x32xbf16, #tpu.memory_space<vmem>>, vector<1x32x32xbf16>
    %60 = vector.shape_cast %59 : vector<1x32x32xbf16> to vector<32x32xbf16>
    %cst_26 = arith.constant dense<0.000000e+00> : vector<64x32xf32>
    %61 = tpu.matmul %58, %60, %cst_26 {dimension_numbers = #tpu.dot_dimension_numbers<[1], [0], [0], [1], [0, 0, 1, 1], [], []>} : vector<64x32xbf16>, vector<32x32xbf16>, vector<64x32xf32> -> vector<64x32xf32>
    %62 = arith.addf %54, %61 : vector<64x32xf32>
    %cst_27 = arith.constant 0.000000e+00 : f32
    %63 = vector.broadcast %cst_27 : f32 to vector<1x32xf32>
    %64 = vector.extract_strided_slice %37 {offsets = [0, 0], sizes = [63, 32], strides = [1, 1]} : vector<64x32xf32> to vector<63x32xf32>
    %65 = tpu.concatenate %63, %64 in 0 : vector<1x32xf32>, vector<63x32xf32> -> vector<64x32xf32>
    %66 = arith.truncf %65 : vector<64x32xf32> to vector<64x32xbf16>
    %c3 = arith.constant 3 : index
    %c0_28 = arith.constant 0 : index
    %c0_29 = arith.constant 0 : index
    %67 = vector.load %arg4[%c3, %c0_28, %c0_29] : memref<9x32x32xbf16, #tpu.memory_space<vmem>>, vector<1x32x32xbf16>
    %68 = vector.shape_cast %67 : vector<1x32x32xbf16> to vector<32x32xbf16>
    %cst_30 = arith.constant dense<0.000000e+00> : vector<64x32xf32>
    %69 = tpu.matmul %66, %68, %cst_30 {dimension_numbers = #tpu.dot_dimension_numbers<[1], [0], [0], [1], [0, 0, 1, 1], [], []>} : vector<64x32xbf16>, vector<32x32xbf16>, vector<64x32xf32> -> vector<64x32xf32>
    %70 = arith.addf %62, %69 : vector<64x32xf32>
    %71 = arith.truncf %8 : vector<64x32xf32> to vector<64x32xbf16>
    %c4 = arith.constant 4 : index
    %c0_31 = arith.constant 0 : index
    %c0_32 = arith.constant 0 : index
    %72 = vector.load %arg4[%c4, %c0_31, %c0_32] : memref<9x32x32xbf16, #tpu.memory_space<vmem>>, vector<1x32x32xbf16>
    %73 = vector.shape_cast %72 : vector<1x32x32xbf16> to vector<32x32xbf16>
    %cst_33 = arith.constant dense<0.000000e+00> : vector<64x32xf32>
    %74 = tpu.matmul %71, %73, %cst_33 {dimension_numbers = #tpu.dot_dimension_numbers<[1], [0], [0], [1], [0, 0, 1, 1], [], []>} : vector<64x32xbf16>, vector<32x32xbf16>, vector<64x32xf32> -> vector<64x32xf32>
    %75 = arith.addf %70, %74 : vector<64x32xf32>
    %76 = vector.extract_strided_slice %31 {offsets = [1, 0], sizes = [63, 32], strides = [1, 1]} : vector<64x32xf32> to vector<63x32xf32>
    %cst_34 = arith.constant 0.000000e+00 : f32
    %77 = vector.broadcast %cst_34 : f32 to vector<1x32xf32>
    %78 = tpu.concatenate %76, %77 in 0 : vector<63x32xf32>, vector<1x32xf32> -> vector<64x32xf32>
    %79 = arith.truncf %78 : vector<64x32xf32> to vector<64x32xbf16>
    %c5 = arith.constant 5 : index
    %c0_35 = arith.constant 0 : index
    %c0_36 = arith.constant 0 : index
    %80 = vector.load %arg4[%c5, %c0_35, %c0_36] : memref<9x32x32xbf16, #tpu.memory_space<vmem>>, vector<1x32x32xbf16>
    %81 = vector.shape_cast %80 : vector<1x32x32xbf16> to vector<32x32xbf16>
    %cst_37 = arith.constant dense<0.000000e+00> : vector<64x32xf32>
    %82 = tpu.matmul %79, %81, %cst_37 {dimension_numbers = #tpu.dot_dimension_numbers<[1], [0], [0], [1], [0, 0, 1, 1], [], []>} : vector<64x32xbf16>, vector<32x32xbf16>, vector<64x32xf32> -> vector<64x32xf32>
    %83 = arith.addf %75, %82 : vector<64x32xf32>
    %84 = vector.extract_strided_slice %37 {offsets = [7, 0], sizes = [57, 32], strides = [1, 1]} : vector<64x32xf32> to vector<57x32xf32>
    %cst_38 = arith.constant 0.000000e+00 : f32
    %85 = vector.broadcast %cst_38 : f32 to vector<7x32xf32>
    %86 = tpu.concatenate %84, %85 in 0 : vector<57x32xf32>, vector<7x32xf32> -> vector<64x32xf32>
    %87 = arith.truncf %86 : vector<64x32xf32> to vector<64x32xbf16>
    %c6 = arith.constant 6 : index
    %c0_39 = arith.constant 0 : index
    %c0_40 = arith.constant 0 : index
    %88 = vector.load %arg4[%c6, %c0_39, %c0_40] : memref<9x32x32xbf16, #tpu.memory_space<vmem>>, vector<1x32x32xbf16>
    %89 = vector.shape_cast %88 : vector<1x32x32xbf16> to vector<32x32xbf16>
    %cst_41 = arith.constant dense<0.000000e+00> : vector<64x32xf32>
    %90 = tpu.matmul %87, %89, %cst_41 {dimension_numbers = #tpu.dot_dimension_numbers<[1], [0], [0], [1], [0, 0, 1, 1], [], []>} : vector<64x32xbf16>, vector<32x32xbf16>, vector<64x32xf32> -> vector<64x32xf32>
    %91 = arith.addf %83, %90 : vector<64x32xf32>
    %92 = vector.extract_strided_slice %8 {offsets = [8, 0], sizes = [56, 32], strides = [1, 1]} : vector<64x32xf32> to vector<56x32xf32>
    %cst_42 = arith.constant 0.000000e+00 : f32
    %93 = vector.broadcast %cst_42 : f32 to vector<8x32xf32>
    %94 = tpu.concatenate %92, %93 in 0 : vector<56x32xf32>, vector<8x32xf32> -> vector<64x32xf32>
    %95 = arith.truncf %94 : vector<64x32xf32> to vector<64x32xbf16>
    %c7 = arith.constant 7 : index
    %c0_43 = arith.constant 0 : index
    %c0_44 = arith.constant 0 : index
    %96 = vector.load %arg4[%c7, %c0_43, %c0_44] : memref<9x32x32xbf16, #tpu.memory_space<vmem>>, vector<1x32x32xbf16>
    %97 = vector.shape_cast %96 : vector<1x32x32xbf16> to vector<32x32xbf16>
    %cst_45 = arith.constant dense<0.000000e+00> : vector<64x32xf32>
    %98 = tpu.matmul %95, %97, %cst_45 {dimension_numbers = #tpu.dot_dimension_numbers<[1], [0], [0], [1], [0, 0, 1, 1], [], []>} : vector<64x32xbf16>, vector<32x32xbf16>, vector<64x32xf32> -> vector<64x32xf32>
    %99 = arith.addf %91, %98 : vector<64x32xf32>
    %100 = vector.extract_strided_slice %31 {offsets = [9, 0], sizes = [55, 32], strides = [1, 1]} : vector<64x32xf32> to vector<55x32xf32>
    %cst_46 = arith.constant 0.000000e+00 : f32
    %101 = vector.broadcast %cst_46 : f32 to vector<9x32xf32>
    %102 = tpu.concatenate %100, %101 in 0 : vector<55x32xf32>, vector<9x32xf32> -> vector<64x32xf32>
    %103 = arith.truncf %102 : vector<64x32xf32> to vector<64x32xbf16>
    %c8 = arith.constant 8 : index
    %c0_47 = arith.constant 0 : index
    %c0_48 = arith.constant 0 : index
    %104 = vector.load %arg4[%c8, %c0_47, %c0_48] : memref<9x32x32xbf16, #tpu.memory_space<vmem>>, vector<1x32x32xbf16>
    %105 = vector.shape_cast %104 : vector<1x32x32xbf16> to vector<32x32xbf16>
    %cst_49 = arith.constant dense<0.000000e+00> : vector<64x32xf32>
    %106 = tpu.matmul %103, %105, %cst_49 {dimension_numbers = #tpu.dot_dimension_numbers<[1], [0], [0], [1], [0, 0, 1, 1], [], []>} : vector<64x32xbf16>, vector<32x32xbf16>, vector<64x32xf32> -> vector<64x32xf32>
    %107 = arith.addf %99, %106 : vector<64x32xf32>
    %c0_50 = arith.constant 0 : index
    %c0_51 = arith.constant 0 : index
    %108 = vector.load %arg5[%c0_50, %c0_51] : memref<1x32xf32, #tpu.memory_space<vmem>>, vector<1x32xf32>
    %109 = vector.broadcast %108 : vector<1x32xf32> to vector<64x32xf32>
    %110 = arith.addf %107, %109 : vector<64x32xf32>
    %cst_52 = arith.constant 0.000000e+00 : f32
    %111 = vector.broadcast %cst_52 : f32 to vector<64x32xf32>
    %112 = arith.maximumf %110, %111 : vector<64x32xf32>
    %113 = arith.truncf %112 : vector<64x32xf32> to vector<64x32xbf16>
    %c0_53 = arith.constant 0 : index
    %c0_54 = arith.constant 0 : index
    %114 = vector.load %arg6[%c0_53, %c0_54] : memref<32x128xbf16, #tpu.memory_space<vmem>>, vector<32x128xbf16>
    %cst_55 = arith.constant dense<0.000000e+00> : vector<64x128xf32>
    %115 = tpu.matmul %113, %114, %cst_55 {dimension_numbers = #tpu.dot_dimension_numbers<[1], [0], [0], [1], [0, 0, 1, 1], [], []>} : vector<64x32xbf16>, vector<32x128xbf16>, vector<64x128xf32> -> vector<64x128xf32>
    %c0_56 = arith.constant 0 : index
    %c0_57 = arith.constant 0 : index
    %116 = vector.load %arg7[%c0_56, %c0_57] : memref<64x128xbf16, #tpu.memory_space<vmem>>, vector<64x128xbf16>
    %cst_58 = arith.constant dense<0.000000e+00> : vector<64x128xf32>
    %117 = tpu.matmul %1, %116, %cst_58 {dimension_numbers = #tpu.dot_dimension_numbers<[1], [0], [0], [1], [0, 0, 1, 1], [], []>} : vector<64x64xbf16>, vector<64x128xbf16>, vector<64x128xf32> -> vector<64x128xf32>
    %118 = arith.addf %115, %117 : vector<64x128xf32>
    %c0_59 = arith.constant 0 : index
    %c0_60 = arith.constant 0 : index
    %119 = vector.load %arg8[%c0_59, %c0_60] : memref<1x128xf32, #tpu.memory_space<vmem>>, vector<1x128xf32>
    %120 = vector.broadcast %119 : vector<1x128xf32> to vector<64x128xf32>
    %121 = arith.addf %118, %120 : vector<64x128xf32>
    %cst_61 = arith.constant 0.000000e+00 : f32
    %122 = vector.broadcast %cst_61 : f32 to vector<64x128xf32>
    %123 = arith.maximumf %121, %122 : vector<64x128xf32>
    %c0_62 = arith.constant 0 : index
    %c0_63 = arith.constant 0 : index
    %c0_64 = arith.constant 0 : index
    %124 = vector.load %arg9[%c0_62, %c0_63, %c0_64] : memref<1x64x128xf32, #tpu.memory_space<vmem>>, vector<1x64x128xf32>
    %125 = vector.shape_cast %124 : vector<1x64x128xf32> to vector<64x128xf32>
    %126 = vector.shape_cast %123 : vector<64x128xf32> to vector<1x64x128xf32>
    tpu.vector_store %arg9[%c0_62, %c0_63, %c0_64], %126 {strides = array<i32>} : memref<1x64x128xf32, #tpu.memory_space<vmem>>, vector<1x64x128xf32>,
    return
  }
  func.func @transform_0(%arg0: i32) -> (i32, i32, i32) {
    %c0_i32 = arith.constant 0 : i32
    %c0_i32_0 = arith.constant 0 : i32
    %c0_i32_1 = arith.constant 0 : i32
    return %arg0, %c0_i32, %c0_i32_0 : i32, i32, i32
  }
  func.func @transform_1(%arg0: i32) -> (i32, i32) {
    %c0_i32 = arith.constant 0 : i32
    %c0_i32_0 = arith.constant 0 : i32
    %c0_i32_1 = arith.constant 0 : i32
    return %c0_i32, %c0_i32_0 : i32, i32
  }
  func.func @transform_2(%arg0: i32) -> (i32, i32) {
    %c0_i32 = arith.constant 0 : i32
    %c0_i32_0 = arith.constant 0 : i32
    %c0_i32_1 = arith.constant 0 : i32
    return %c0_i32, %c0_i32_0 : i32, i32
  }
  func.func @transform_3(%arg0: i32) -> (i32, i32, i32) {
    %c0_i32 = arith.constant 0 : i32
    %c0_i32_0 = arith.constant 0 : i32
    %c0_i32_1 = arith.constant 0 : i32
    %c0_i32_2 = arith.constant 0 : i32
    return %c0_i32, %c0_i32_0, %c0_i32_1 : i32, i32, i32
  }
  func.func @transform_4(%arg0: i32) -> (i32, i32) {
    %c0_i32 = arith.constant 0 : i32
    %c0_i32_0 = arith.constant 0 : i32
    %c0_i32_1 = arith.constant 0 : i32
    return %c0_i32, %c0_i32_0 : i32, i32
  }
  func.func @transform_5(%arg0: i32) -> (i32, i32) {
    %c0_i32 = arith.constant 0 : i32
    %c0_i32_0 = arith.constant 0 : i32
    %c0_i32_1 = arith.constant 0 : i32
    return %c0_i32, %c0_i32_0 : i32, i32
  }
  func.func @transform_6(%arg0: i32) -> (i32, i32) {
    %c0_i32 = arith.constant 0 : i32
    %c0_i32_0 = arith.constant 0 : i32
    %c0_i32_1 = arith.constant 0 : i32
    return %c0_i32, %c0_i32_0 : i32, i32
  }
  func.func @transform_7(%arg0: i32) -> (i32, i32) {
    %c0_i32 = arith.constant 0 : i32
    %c0_i32_0 = arith.constant 0 : i32
    %c0_i32_1 = arith.constant 0 : i32
    return %c0_i32, %c0_i32_0 : i32, i32
  }
  func.func @transform_8(%arg0: i32) -> (i32, i32, i32) {
    %c0_i32 = arith.constant 0 : i32
    %c0_i32_0 = arith.constant 0 : i32
    %c0_i32_1 = arith.constant 0 : i32
    return %arg0, %c0_i32, %c0_i32_0 : i32, i32, i32
  }
}

</mosaic_0001>

<bundles_post_ra>
// kernel: residual_forward.1
= control target key start
LH: loop header
LB: loop body
LE: loop exit
PB: predicated region body
PF: predicated region fallthrough
CT: control target
= control target key end

     0   :  { %13 = vsyncpa [#allocation3], 0  ;;  %s2356_s0 = inlined_call_operand.vmem [shape: bf16[2,64,64], index: 0, kind: input, shape index: {}]   ;;  %s2357_s1 = inlined_call_operand.vmem [shape: bf16[64,32], index: 1, kind: input, shape index: {}]   ;;  %s2358_s2 = inlined_call_operand.vmem [shape: f32[1,32], index: 2, kind: input, shape index: {}]   ;;  %s2359_s3 = inlined_call_operand.vmem [shape: bf16[9,32,32], index: 3, kind: input, shape index: {}]   ;;  %s2360_s4 = inlined_call_operand.vmem [shape: f32[1,32], index: 4, kind: input, shape index: {}]   ;;  %s2361_s5 = inlined_call_operand.vmem [shape: bf16[32,128], index: 5, kind: input, shape index: {}]   ;;  %s2362_s6 = inlined_call_operand.vmem [shape: bf16[64,128], index: 6, kind: input, shape index: {}]   ;;  %s2363_s7 = inlined_call_operand.vmem [shape: f32[1,128], index: 7, kind: input, shape index: {}]   ;;  %s2364_s8 = inlined_call_operand.hbm [shape: f32[2,64,128], index: 8, kind: output, shape index: {}]  }
   0x1   :  { %15 = vsyncpa [#allocation3 + $0x1], 0  ;;  %s1895_s27 = smov 0   ;;  %s1897_s28 = smov 0  }
   0x2   :  { %s1899_s29 = smov 0   ;;  %s1901_s30 = smov 0  }
   0x3 LB: > { %s1916_s9 = sadd.s32 4294967295, %s1845_s30   ;;  %s1484_s10 = sadd.s32 4294967294, %s1845_s30   ;;  %s1845_s30 = sphi %s1901_s30, %s2374_s30   ;;  %s1841_s29 = sphi %s1899_s29, %s2373_s29   ;;  %s1837_s28 = sphi %s1897_s28, %s2372_s28   ;;  %s1833_s27 = sphi %s1895_s27, %s2371_s27  }
   0x4   : > { %s1920_s11 = sadd.s32 1, %s1845_s30   ;;  %s201_s12 = sadd.s32 1, %s1841_s29 }
   0x5   : > { %s198_s13 = ssub.s32 %s1845_s30, %s1920_s11  ;;  %p211_p0 = scmp.ne.s32.totalorder %s1841_s29, %s1837_s28 }
   0x6   : > { %p199_p1 = scmp.eq.s32.totalorder %s198_s13, 0  ;;  %p212_p2 = scmp.eq.s32.totalorder %s1916_s9, 1 }
   0x7   : > { %p217_p3 = scmp.ne.s32.totalorder %s1837_s28, %s1833_s27  ;;  %p218_p4 = scmp.eq.s32.totalorder %s1484_s10, 1 }
   0x8   : > { %s1931_s14 = scalar_select %p199_p1, %s1841_s29, %s201_s12  }
   0x9   : > { %p1933_p5 = por %p212_p2, %p211_p0  ;;  %p1937_p6 = por %p218_p4, %p217_p3 }
   0xa   : > { %p1487_p7 = scmp.ge.s32.totalorder %s1845_s30, 1  ;;  %p265_p8 = scmp.lt.s32.totalorder %s1845_s30, 3 }
   0xc   : > { %p266_p9 = pnand %p1487_p7, %p265_p8 }
   0xd   : > { %p299_p10 = scmp.lt.s32.totalorder (!%p266_p9), %s1916_s9, 1  ;;  %s296_s17 = sand.u32 (!%p266_p9), 1, %s1837_s28  }
   0xe   : > { %269 = sbr.rel (%p266_p9) target bundleno = 639 (0x27f), region = 52  ;;  %s1488_s20 = sshll.u32 (!%p266_p9), %s296_s17, 6 }
   0xf   : > { %s1737_s22 = sshll.u32 (!%p266_p9), %s1916_s9, 6  ;;  %s1407_s12 = scalar_lea.sflag (!%p266_p9), [#allocation3], %s296_s17 }
  0x10   : > { %s1418_s25 = scalar_lea.hbm (!%p266_p9), %s2364_s8, %s1737_s22 }
  0x11   : > { %s1421_s10 = sshll.u32 (!%p266_p9), %s1418_s25, 4  ;;  %s1422_s10 = int_to_ptr.hbm [resolvable:$true] %s1421_s10 }
  0x13   : > { %v1712_v0 = vld [vmem:[%s2357_s1 + $0x18] sm:$0xff]  ;;  %v1711_v1 = vld [vmem:[%s2357_s1 + $0x10] sm:$0xff]  ;;  %s300_s21 = scalar_select %p299_p10, %s1916_s9, 1  ;;  %v1710_v2 = vld [vmem:[%s2357_s1 + $0x8] sm:$0xff]  ;;  %vm369_vm0 = vcmask 523264   ;;  %v419_v17 = vlaneseq  ;;  %vm646_vm2 = vcmask 261120  }
  0x14   : > { %386 = vmatpush.bf16.msra.mxu0 %v1712_v0  ;;  %v1709_v3 = vld [vmem:[%s2357_s1] sm:$0xff]  ;;  %v1716_v8 = vld [vmem:[%s2359_s3 + $0x18] sm:$0xff]  ;;  %v1715_v9 = vld [vmem:[%s2359_s3 + $0x10] sm:$0xff]  ;;  %v1847_v26 = vmov 0.0   ;;  %vm595_vm3 = vcmask 1040384   ;;  %vm749_vm6 = vcmask 1046528  }
  0x15   : > { %s1704_s24 = sshll.u32 %s300_s21, 5  ;;  %665 = vmatpush.bf16.msra.mxu1 %v1716_v8  ;;  %v1714_v10 = vld [vmem:[%s2359_s3 + $0x8] sm:$0xff]  ;;  %v1713_v11 = vld [vmem:[%s2359_s3] sm:$0xff]  ;;  %v1720_v14 = vld [vmem:[%s2359_s3 + $0x38] sm:$0xff]  ;;  %v2006_v19 = vshrl.u32 %v419_v17, 7  ;;  %s2312_s21 = scalar_lea.vmem [#allocation2], %s1488_s20 }
  0x16   : > { %s303_s13 = scalar_lea.vmem %s2356_s0, %s1704_s24  ;;  %718 = vmatpush.bf16.msra.mxu2 %v1714_v10  ;;  %v1718_v12 = vld [vmem:[%s2359_s3 + $0x28] sm:$0xff]  ;;  %v1717_v15 = vld [vmem:[%s2359_s3 + $0x20] sm:$0xff]  ;;  %v1719_v44 = vld [vmem:[%s2359_s3 + $0x30] sm:$0xff]  ;;  %s1419_s26 = sshll.u32 %s2312_s21, 4  ;;  %s1420_s26 = int_to_ptr.vmem [resolvable:$true] %s1419_s26 }
  0x17   : > { %v1960_v4 = vld [vmem:[%s303_s13] sm:$0xff]  ;;  %v1964_v5 = vld [vmem:[%s303_s13 + $0x8] sm:$0xff]  ;;  %v1968_v6 = vld [vmem:[%s303_s13 + $0x10] sm:$0xff]  ;;  %813 = vmatpush.bf16.msra.mxu3 %v1718_v12  ;;  %v432_v21 = vand.u32 7, %v2006_v19  ;;  %v421_v24 = vadd.s32 8, %v2006_v19  ;;  %v422_v36 = vadd.s32 16, %v2006_v19 }
  0x18   : > { %387 = vmatpush.bf16.msra.mxu0 %v1711_v1  ;;  %v1972_v7 = vld [vmem:[%s303_s13 + $0x18] sm:$0xff]  ;;  %v1722_v13 = vld [vmem:[%s2359_s3 + $0x48] sm:$0xff]  ;;  %v1725_v18 = vld [vmem:[%s2359_s3 + $0x60] sm:$0xff]  ;;  %v423_v51 = vadd.s32 24, %v2006_v19  ;;  %v424_v0 = vadd.s32 32, %v2006_v19  ;;  %s1797_s9 = sshra.s32 %s1422_s10, 4  ;;  %s1798_s9 = int_to_ptr.hbm [resolvable:$true] %s1797_s9 }
  0x19   : > { %666 = vmatpush.bf16.msra.mxu1 %v1715_v9  ;;  %v1726_v16 = vld [vmem:[%s2359_s3 + $0x68] sm:$0xff]  ;;  %v2011_v20 = vld [vmem:[%s2358_s2] ss:$0 sm:$0xff]  ;;  %vm556_vm1 = vcmp.lt.s32.totalorder %v432_v21, 7  ;;  %v439_v29 = vand.u32 7, %v421_v24  ;;  %vm524_vm4 = vcmp.gt.s32.totalorder %v432_v21, 0  ;;  %p1804_p0 = scmp.lt.s32.totalorder %s1798_s9, %s2364_s8 }
  0x1a   : > { %719 = vmatpush.bf16.msra.mxu2 %v1713_v11  ;;  %v446_v42 = vand.u32 7, %v422_v36  ;;  %v1721_v43 = vld [vmem:[%s2359_s3 + $0x40] sm:$0xff]  ;;  %v453_v57 = vand.u32 7, %v423_v51  ;;  %v460_v9 = vand.u32 7, %v424_v0  ;;  %v1723_v40 = vld [vmem:[%s2359_s3 + $0x50] sm:$0xff]  ;;  %s1799_s13 = scalar_lea.hbm %s1798_s9, 64 }
  0x1b   : > { %814 = vmatpush.bf16.msra.mxu3 %v1717_v15  ;;  %vm525_vm5 = vcmp.gt.s32.totalorder %v439_v29, 0  ;;  %vm2032_vm7 = vcmp.lt.s32.totalorder %v439_v29, 7  ;;  %p1800_p11 = scmp.ne.s32.totalorder %s1798_s9, %s1799_s13  ;;  %s1803_s20 = scalar_lea.hbm %s2364_s8, 128 }
  0x1c   : > { %388 = vmatpush.bf16.msra.mxu0 %v1710_v2  ;;  %vm558_vm8 = vcmp.lt.s32.totalorder %v446_v42, 7  ;;  %vm526_vm9 = vcmp.gt.s32.totalorder %v446_v42, 0  ;;  %vm527_vm10 = vcmp.gt.s32.totalorder %v453_v57, 0  ;;  %vm559_vm11 = vcmp.lt.s32.totalorder %v453_v57, 7  ;;  %p1805_p1 = scmp.lt.s32.totalorder %s1803_s20, %s1799_s13 }
  0x1d   : > { %887 = vmatpush.bf16.msrb.mxu1 %v1720_v14  ;;  %vm560_vm12 = vcmp.lt.s32.totalorder %v460_v9, 7  ;;  %vm2103_vm13 = vcmp.gt.s32.totalorder %v460_v9, 0  ;;  %p1801_p12 = pnand %p1800_p11, %p1933_p5 }
  0x1e   : > { %957 = vmatpush.bf16.msrb.mxu2 %v1722_v13  ;;  %p1806_p2 = por %p1805_p1, %p1804_p0 }
  0x1f   : > { %p1802_p13 = pneg %p1801_p12 }
  0x20   : > { %389 = vmatpush.bf16.msra.mxu0 %v1709_v3 }
  0x21   : > { %888 = vmatpush.bf16.msrb.mxu1 %v1719_v44  ;;  %p1807_p3 = pnand %p1806_p2, %p1802_p13 }
  0x22   : > { %958 = vmatpush.bf16.msrb.mxu2 %v1721_v43 }
  0x23   : > { %1523 = vmatmul.msk.bf16.vlgmr.msra.gmra.mxu0 %vm369_vm0, %v1960_v4 }
  0x24   : > { %1089 = vmatpush.bf16.msrb.mxu0 %v1726_v16  ;;  %v425_v16 = vadd.s32 40, %v2006_v19 }
  0x28   : > { %1090 = vmatpush.bf16.msrb.mxu0 %v1725_v18  ;;  %v1724_v18 = vld [vmem:[%s2359_s3 + $0x58] sm:$0xff] }
  0x29   : > { %1029 = vmatpush.bf16.msrb.mxu3 %v1724_v18 }
  0x2d   : > { %1030 = vmatpush.bf16.msrb.mxu3 %v1723_v40 }
  0x33   : > { %1524 = vmatmul.msk.bf16.gmra.mxu0 %vm369_vm0, %v1964_v5 }
  0x43   : > { %1525 = vmatmul.msk.bf16.gmra.mxu0 %vm369_vm0, %v1968_v6 }
  0x53   : > { %1526 = vmatmul.msk.bf16.gmra.mxu0 %vm369_vm0, %v1972_v7 }
  0xa0   : > { %v391_v22 = vpop.f32.mrf.mxu0 }
  0xa1   : > { %v392_v23 = vadd.f32 %v2011_v20, %v391_v22 }
  0xa3   : > { %v2016_v25 = vmax.f32 %v392_v23, 0.0 }
  0xa5   : > { %v625_v27 = vpack.c.bf16 %v2016_v25, %v1847_v26  ;;  %v580_v28 = vsel %vm556_vm1, %v2016_v25, 0.0  ;;  %v548_v35 = vsel %vm524_vm4, %v2016_v25, 0.0 }
  0xa6   : > { %v596_v30 = vrot.slane %v580_v28, 7  ;;  %v750_v38 = vrot.slane %v548_v35, 1  ;;  %v426_v35 = vadd.s32 48, %v2006_v19 }
  0xa7   : > { %1539 = vmatmul.msk.bf16.vlgmr.msra.gmra.mxu1 %vm646_vm2, %v625_v27  ;;  %v467_v27 = vand.u32 7, %v425_v16 }
  0xa8   : > { %v393_v31 = vpop.f32.mrf.mxu0  ;;  %v2022_v32 = vsel %vm595_vm3, 0.0, %v596_v30  ;;  %v773_v47 = vsel %vm749_vm6, 0.0, %v750_v38  ;;  %v474_v44 = vand.u32 7, %v426_v35  ;;  %v1729_v35 = vld [vmem:[%s2359_s3 + $0x80] sm:$0xff] }
  0xa9   : > { %v394_v33 = vadd.f32 %v2011_v20, %v393_v31  ;;  %v617_v34 = vpack.c.bf16 %v2022_v32, %v1847_v26  ;;  %vm529_vm14 = vcmp.gt.s32.totalorder %v467_v27, 0  ;;  %vm561_vm15 = vcmp.lt.s32.totalorder %v467_v27, 7 }
  0xaa   : > { %vm562_vm1 = vcmp.lt.s32.totalorder %v474_v44, 7  ;;  %vm530_vm4 = vcmp.gt.s32.totalorder %v474_v44, 0 }
  0xab   : > { %v2028_v37 = vmax.f32 %v394_v33, 0.0  ;;  %1551 = vmatmul.msk.bf16.vlgmr.msra.gmra.mxu2 %vm646_vm2, %v617_v34 }
  0xad   : > { %v549_v39 = vsel %vm525_vm5, %v2028_v37, 0.0  ;;  %v581_v48 = vsel %vm2032_vm7, %v2028_v37, 0.0 }
  0xae   : > { %v751_v41 = vrot.slane %v549_v39, 1  ;;  %v597_v53 = vrot.slane %v581_v48, 7  ;;  %v1728_v39 = vld [vmem:[%s2359_s3 + $0x78] sm:$0xff] }
  0xaf   : > { %1147 = vmatpush.bf16.msra.mxu1 %v1728_v39 }
  0xb0   : > { %v396_v45 = vpop.f32.mrf.mxu0  ;;  %v2043_v46 = vsel %vm749_vm6, %v750_v38, %v751_v41  ;;  %v2063_v59 = vsel %vm595_vm3, %v596_v30, %v597_v53  ;;  %v1730_v38 = vld [vmem:[%s2359_s3 + $0x88] sm:$0xff] }
  0xb1   : > { %v397_v49 = vadd.f32 %v2011_v20, %v396_v45  ;;  %v774_v50 = vpack.c.bf16 %v2043_v46, %v773_v47  ;;  %1205 = vmatpush.bf16.msra.mxu2 %v1730_v38  ;;  %v848_v27 = vpack.c.bf16 %v2063_v59, %v2022_v32  ;;  %v1727_v32 = vld [vmem:[%s2359_s3 + $0x70] sm:$0xff] }
  0xb3   : > { %v2052_v52 = vmax.f32 %v397_v49, 0.0  ;;  %1567 = vmatmul.msk.bf16.vlgmr.msra.gmra.mxu3 %vm646_vm2, %v774_v50  ;;  %1148 = vmatpush.bf16.msra.mxu1 %v1727_v32 }
  0xb5   : > { %v582_v54 = vsel %vm558_vm8, %v2052_v52, 0.0  ;;  %v2058_v55 = vpack.c.bf16 %v2052_v52, %v2028_v37  ;;  %v550_v61 = vsel %vm526_vm9, %v2052_v52, 0.0  ;;  %1206 = vmatpush.bf16.msra.mxu2 %v1729_v35 }
  0xb6   : > { %v599_v56 = vrot.slane %v582_v54, 7  ;;  %v753_v2 = vrot.slane %v550_v61, 1 }
  0xb7   : > { %1540 = vmatmul.msk.bf16.gmra.mxu1 %vm646_vm2, %v2058_v55 }
  0xb8   : > { %v398_v58 = vpop.f32.mrf.mxu0  ;;  %v2066_v60 = vsel %vm595_vm3, %v597_v53, %v599_v56  ;;  %v2079_v11 = vsel %vm749_vm6, %v751_v41, %v753_v2  ;;  %v427_v53 = vadd.s32 56, %v2006_v19 }
  0xb9   : > { %v399_v62 = vadd.f32 %v2011_v20, %v398_v58  ;;  %v618_v63 = vpack.c.bf16 %v2066_v60, %v2063_v59  ;;  %v990_v59 = vpack.c.bf16 %v2079_v11, %v2043_v46 }
  0xbb   : > { %v2073_v1 = vmax.f32 %v399_v62, 0.0  ;;  %1552 = vmatmul.msk.bf16.gmra.mxu2 %vm646_vm2, %v618_v63  ;;  %1631 = vmatmul.msk.bf16.vlgmr.msrb.gmra.mxu0 %vm646_vm2, %v618_v63  ;;  %v481_v62 = vand.u32 7, %v427_v53 }
  0xbd   : > { %v551_v3 = vsel %vm527_vm10, %v2073_v1, 0.0  ;;  %v583_v13 = vsel %vm559_vm11, %v2073_v1, 0.0  ;;  %vm531_vm5 = vcmp.gt.s32.totalorder %v481_v62, 0  ;;  %vm563_vm7 = vcmp.lt.s32.totalorder %v481_v62, 7 }
  0xbe   : > { %v755_v8 = vrot.slane %v551_v3, 1  ;;  %v601_v21 = vrot.slane %v583_v13, 7 }
  0xc0   : > { %v401_v10 = vpop.f32.mrf.mxu0  ;;  %v2082_v12 = vsel %vm749_vm6, %v753_v2, %v755_v8  ;;  %v2110_v29 = vsel %vm595_vm3, %v599_v56, %v601_v21 }
  0xc1   : > { %v402_v14 = vadd.f32 %v2011_v20, %v401_v10  ;;  %v2088_v15 = vpack.c.bf16 %v2082_v12, %v2079_v11 }
  0xc3   : > { %v2091_v17 = vmax.f32 %v402_v14, 0.0  ;;  %1568 = vmatmul.msk.bf16.gmra.mxu3 %vm646_vm2, %v2088_v15 }
  0xc5   : > { %v584_v22 = vsel %vm560_vm12, %v2091_v17, 0.0  ;;  %v2101_v23 = vpack.c.bf16 %v2091_v17, %v2073_v1  ;;  %v552_v31 = vsel %vm2103_vm13, %v2091_v17, 0.0 }
  0xc6   : > { %v603_v26 = vrot.slane %v584_v22, 7  ;;  %v757_v41 = vrot.slane %v552_v31, 1 }
  0xc7   : > { %1541 = vmatmul.msk.bf16.gmra.mxu1 %vm646_vm2, %v2101_v23 }
  0xc8   : > { %v403_v28 = vpop.f32.mrf.mxu0  ;;  %v2113_v30 = vsel %vm595_vm3, %v601_v21, %v603_v26  ;;  %v758_v47 = vsel %vm749_vm6, %v755_v8, %v757_v41 }
  0xc9   : > { %v404_v33 = vadd.f32 %v2011_v20, %v403_v28  ;;  %v619_v34 = vpack.c.bf16 %v2113_v30, %v2110_v29  ;;  %v991_v38 = vpack.c.bf16 %v758_v47, %v2082_v12 }
  0xcb   : > { %v2122_v36 = vmax.f32 %v404_v33, 0.0  ;;  %1553 = vmatmul.msk.bf16.gmra.mxu2 %vm646_vm2, %v619_v34  ;;  %1632 = vmatmul.msk.bf16.gmra.mxu0 %vm646_vm2, %v619_v34  ;;  %v918_v33 = vpack.c.bf16 %v2028_v37, %v2016_v25  ;;  %v849_v25 = vpack.c.bf16 %v2110_v29, %v2066_v60  ;;  %v919_v37 = vpack.c.bf16 %v2073_v1, %v2052_v52 }
  0xcd   : > { %v553_v42 = vsel %vm529_vm14, %v2122_v36, 0.0  ;;  %v585_v49 = vsel %vm561_vm15, %v2122_v36, 0.0  ;;  %v920_v46 = vpack.c.bf16 %v2122_v36, %v2091_v17 }
  0xce   : > { %v759_v43 = vrot.slane %v553_v42, 1  ;;  %v605_v56 = vrot.slane %v585_v49, 7 }
  0xd0   : > { %v406_v45 = vpop.f32.mrf.mxu0  ;;  %v2138_v48 = vsel %vm749_vm6, %v757_v41, %v759_v43  ;;  %v606_v0 = vsel %vm595_vm3, %v603_v26, %v605_v56 }
  0xd1   : > { %v407_v50 = vadd.f32 %v2011_v20, %v406_v45  ;;  %v2143_v51 = vpack.c.bf16 %v2138_v48, %v758_v47  ;;  %v850_v39 = vpack.c.bf16 %v606_v0, %v2113_v30 }
  0xd3   : > { %v417_v54 = vmax.f32 %v407_v50, 0.0  ;;  %1569 = vmatmul.msk.bf16.gmra.mxu3 %vm646_vm2, %v2143_v51 }
  0xd5   : > { %v586_v57 = vsel %vm562_vm1, %v417_v54, 0.0  ;;  %v2149_v58 = vpack.c.bf16 %v417_v54, %v2122_v36  ;;  %v554_v2 = vsel %vm530_vm4, %v417_v54, 0.0 }
  0xd6   : > { %v607_v61 = vrot.slane %v586_v57, 7  ;;  %v761_v10 = vrot.slane %v554_v2, 1 }
  0xd7   : > { %1542 = vmatmul.msk.bf16.gmra.mxu1 %vm646_vm2, %v2149_v58 }
  0xd8   : > { %v408_v63 = vpop.f32.mrf.mxu0  ;;  %v608_v19 = vsel %vm595_vm3, %v605_v56, %v607_v61  ;;  %v762_v18 = vsel %vm749_vm6, %v759_v43, %v761_v10 }
  0xd9   : > { %v409_v3 = vadd.f32 %v2011_v20, %v408_v63  ;;  %v620_v8 = vpack.c.bf16 %v608_v19, %v606_v0  ;;  %v992_v60 = vpack.c.bf16 %v762_v18, %v2138_v48 }
  0xdb   : > { %v2156_v9 = vmax.f32 %v409_v3, 0.0  ;;  %1554 = vmatmul.msk.bf16.gmra.mxu2 %vm646_vm2, %v620_v8  ;;  %1633 = vmatmul.msk.bf16.gmra.mxu0 %vm646_vm2, %v620_v8 }
  0xdd   : > { %v555_v13 = vsel %vm531_vm5, %v2156_v9, 0.0  ;;  %v587_v16 = vsel %vm563_vm7, %v2156_v9, 0.0  ;;  %v921_v1 = vpack.c.bf16 %v2156_v9, %v417_v54  ;;  %v1120_v57 = vpack.c.bf16 0.0, %v2156_v9 }
  0xde   : > { %v763_v14 = vrot.slane %v555_v13, 1  ;;  %v845_v26 = vrot.slane %v587_v16, 7 }
  0xe0   : > { %v764_v21 = vsel %vm749_vm6, %v761_v10, %v763_v14  ;;  %v2165_v20 = vsel %vm749_vm6, %v763_v14, 0.0  ;;  %v846_v28 = vsel %vm595_vm3, %v607_v61, %v845_v26  ;;  %v1061_v31 = vsel %vm595_vm3, %v845_v26, 0.0  ;;  %v1732_v10 = vld [vmem:[%s2361_s5 + $0x8] sm:$0xff] }
  0xe1   : > { %v777_v22 = vpack.c.bf16 %v764_v21, %v762_v18  ;;  %v993_v24 = vpack.c.bf16 %v2165_v20, %v764_v21  ;;  %v1062_v34 = vpack.c.bf16 %v1061_v31, %v846_v28  ;;  %v851_v52 = vpack.c.bf16 %v846_v28, %v608_v19  ;;  %1355 = vmatpush.bf16.msra.mxu0 %v1732_v10 }
  0xe2   : > { %v1178_v19 = vpack.c.bf16 0.0, %v2165_v20 }
  0xe3   : > { %1570 = vmatmul.msk.bf16.gmra.mxu3 %vm646_vm2, %v777_v22 }
  0xe7   : > { %1583 = vmatmul.msk.bf16.vlgmr.msrb.gmra.mxu1 %vm646_vm2, %v848_v27 }
  0xeb   : > { %1599 = vmatmul.msk.bf16.vlgmr.msrb.gmra.mxu2 %vm646_vm2, %v918_v33  ;;  %1634 = vmatmul.msk.bf16.gmra.mxu0 %vm646_vm2, %v1062_v34  ;;  %v1734_v34 = vld [vmem:[%s2362_s6 + $0x8] sm:$0xff] }
  0xf3   : > { %1615 = vmatmul.msk.bf16.vlgmr.msrb.gmra.mxu3 %vm646_vm2, %v990_v59 }
  0xf7   : > { %1584 = vmatmul.msk.bf16.gmra.mxu1 %vm646_vm2, %v849_v25  ;;  %v1731_v25 = vld [vmem:[%s2361_s5] sm:$0xff] }
  0xf8   : > { %1356 = vmatpush.bf16.msra.mxu0 %v1731_v25 }
  0xfb   : > { %1600 = vmatmul.msk.bf16.gmra.mxu2 %vm646_vm2, %v919_v37 }
 0x103   : > { %1616 = vmatmul.msk.bf16.gmra.mxu3 %vm646_vm2, %v991_v38 }
 0x107   : > { %1585 = vmatmul.msk.bf16.gmra.mxu1 %vm646_vm2, %v850_v39 }
 0x10b   : > { %1601 = vmatmul.msk.bf16.gmra.mxu2 %vm646_vm2, %v920_v46  ;;  %v1733_v46 = vld [vmem:[%s2362_s6] sm:$0xff] }
 0x113   : > { %1617 = vmatmul.msk.bf16.gmra.mxu3 %vm646_vm2, %v992_v60 }
 0x117   : > { %1586 = vmatmul.msk.bf16.gmra.mxu1 %vm646_vm2, %v851_v52 }
 0x11b   : > { %1602 = vmatmul.msk.bf16.gmra.mxu2 %vm646_vm2, %v921_v1 }
 0x123   : > { %1618 = vmatmul.msk.bf16.gmra.mxu3 %vm646_vm2, %v993_v24 }
 0x124   : > { %v668_v11 = vpop.f32.mrf.mxu1 }
 0x127   : > { %1647 = vmatmul.msk.bf16.vlgmr.msra.gmra.mxu1 %vm646_vm2, %v2058_v55 }
 0x12b   : > { %1663 = vmatmul.msk.bf16.vlgmr.msra.gmra.mxu2 %vm646_vm2, %v2088_v15 }
 0x12c   : > { %v670_v12 = vpop.f32.mrf.mxu1 }
 0x12e   : > { %v721_v17 = vpop.f32.mrf.mxu2 }
 0x12f   : > { %v722_v29 = vadd.f32 %v721_v17, %v668_v11 }
 0x134   : > { %v673_v30 = vpop.f32.mrf.mxu1 }
 0x136   : > { %v723_v36 = vpop.f32.mrf.mxu2  ;;  %v816_v40 = vpop.f32.mrf.mxu3 }
 0x137   : > { %v2210_v41 = vadd.f32 %v723_v36, %v670_v12  ;;  %v836_v42 = vadd.f32 %v816_v40, %v722_v29  ;;  %1648 = vmatmul.msk.bf16.gmra.mxu1 %vm646_vm2, %v2101_v23 }
 0x138   : > { %v1092_v36 = vpop.f32.mrf.mxu0 }
 0x13b   : > { %1664 = vmatmul.msk.bf16.gmra.mxu2 %vm646_vm2, %v2143_v51 }
 0x13c   : > { %v675_v43 = vpop.f32.mrf.mxu1 }
 0x13e   : > { %v726_v55 = vpop.f32.mrf.mxu2  ;;  %v2216_v44 = vpop.f32.mrf.mxu3 }
 0x13f   : > { %v727_v15 = vadd.f32 %v726_v55, %v673_v30 }
 0x144   : > { %v678_v45 = vpop.f32.mrf.mxu1 }
 0x146   : > { %v728_v47 = vpop.f32.mrf.mxu2  ;;  %v821_v48 = vpop.f32.mrf.mxu3 }
 0x147   : > { %v2218_v49 = vadd.f32 %v728_v47, %v675_v43  ;;  %v838_v50 = vadd.f32 %v821_v48, %v727_v15  ;;  %1649 = vmatmul.msk.bf16.gmra.mxu1 %vm646_vm2, %v2149_v58  ;;  %v1736_v58 = vld [vmem:[%s2362_s6 + $0x18] sm:$0xff]  ;;  %v837_v47 = vadd.f32 %v2216_v44, %v2210_v41 }
 0x148   : > { %1300 = vmatpush.bf16.msra.mxu3 %v1736_v58 }
 0x14b   : > { %1665 = vmatmul.msk.bf16.gmra.mxu2 %vm646_vm2, %v777_v22  ;;  %v1735_v22 = vld [vmem:[%s2362_s6 + $0x10] sm:$0xff] }
 0x14c   : > { %v680_v23 = vpop.f32.mrf.mxu1  ;;  %1301 = vmatpush.bf16.msra.mxu3 %v1735_v22 }
 0x14e   : > { %v731_v53 = vpop.f32.mrf.mxu2  ;;  %v2223_v54 = vpop.f32.mrf.mxu3 }
 0x14f   : > { %v732_v51 = vadd.f32 %v731_v53, %v678_v45  ;;  %v839_v10 = vadd.f32 %v2223_v54, %v2218_v49 }
 0x150   : > { %1302 = vmatpush.bf16.msra.mxu3 %v1734_v34 }
 0x154   : > { %v683_v56 = vpop.f32.mrf.mxu1  ;;  %1303 = vmatpush.bf16.msra.mxu3 %v1733_v46 }
 0x156   : > { %v733_v61 = vpop.f32.mrf.mxu2  ;;  %v826_v62 = vpop.f32.mrf.mxu3 }
 0x157   : > { %v2226_v63 = vadd.f32 %v733_v61, %v680_v23  ;;  %v840_v0 = vadd.f32 %v826_v62, %v732_v51  ;;  %1650 = vmatmul.msk.bf16.gmra.mxu1 %vm646_vm2, %v1120_v57  ;;  %1683 = vmatmul.msk.bf16.vlgmr.msra.gmra.mxu3 %vm369_vm0, %v1960_v4  ;;  %v1094_v4 = vpop.f32.mrf.mxu0 }
 0x15b   : > { %1666 = vmatmul.msk.bf16.gmra.mxu2 %vm646_vm2, %v1178_v19  ;;  %v2278_v19 = vld [vmem:[%s2360_s4] ss:$0 sm:$0xff] }
 0x15c   : > { %v685_v2 = vpop.f32.mrf.mxu1 }
 0x15e   : > { %v736_v3 = vpop.f32.mrf.mxu2  ;;  %v2234_v8 = vpop.f32.mrf.mxu3 }
 0x15f   : > { %v737_v9 = vadd.f32 %v736_v3, %v683_v56  ;;  %v1097_v56 = vpop.f32.mrf.mxu0 }
 0x164   : > { %v890_v13 = vpop.f32.mrf.mxu1 }
 0x165   : > { %v910_v14 = vadd.f32 %v890_v13, %v836_v42 }
 0x166   : > { %v738_v16 = vpop.f32.mrf.mxu2  ;;  %v831_v18 = vpop.f32.mrf.mxu3 }
 0x167   : > { %v2239_v21 = vadd.f32 %v738_v16, %v685_v2  ;;  %v842_v20 = vadd.f32 %v831_v18, %v737_v9  ;;  %1684 = vmatmul.msk.bf16.gmra.mxu3 %vm369_vm0, %v1964_v5  ;;  %v1099_v13 = vpop.f32.mrf.mxu0 }
 0x16c   : > { %v892_v24 = vpop.f32.mrf.mxu1 }
 0x16e   : > { %v960_v26 = vpop.f32.mrf.mxu2  ;;  %v2253_v60 = vpop.f32.mrf.mxu3 }
 0x16f   : > { %v980_v27 = vadd.f32 %v960_v26, %v910_v14  ;;  %v1102_v54 = vpop.f32.mrf.mxu0 }
 0x174   : > { %v895_v28 = vpop.f32.mrf.mxu1 }
 0x175   : > { %v912_v31 = vadd.f32 %v895_v28, %v838_v50  ;;  %v911_v50 = vadd.f32 %v892_v24, %v837_v47 }
 0x176   : > { %v962_v33 = vpop.f32.mrf.mxu2  ;;  %v1032_v29 = vpop.f32.mrf.mxu3 }
 0x177   : > { %v1052_v23 = vadd.f32 %v1032_v29, %v980_v27  ;;  %1685 = vmatmul.msk.bf16.gmra.mxu3 %vm369_vm0, %v1968_v6  ;;  %v981_v51 = vadd.f32 %v962_v33, %v911_v50 }
 0x179   : > { %v1112_v61 = vadd.f32 %v1092_v36, %v1052_v23 }
 0x17c   : > { %v897_v35 = vpop.f32.mrf.mxu1 }
 0x17d   : > { %v913_v16 = vadd.f32 %v897_v35, %v839_v10 }
 0x17e   : > { %v965_v32 = vpop.f32.mrf.mxu2  ;;  %v1034_v55 = vpop.f32.mrf.mxu3 }
 0x17f   : > { %v982_v59 = vadd.f32 %v965_v32, %v912_v31  ;;  %v1053_v57 = vadd.f32 %v1034_v55, %v981_v51 }
 0x184   : > { %v900_v37 = vpop.f32.mrf.mxu1 }
 0x185   : > { %v914_v38 = vadd.f32 %v900_v37, %v840_v0  ;;  %v1113_v0 = vadd.f32 %v1094_v4, %v1053_v57 }
 0x186   : > { %v967_v39 = vpop.f32.mrf.mxu2  ;;  %v1037_v48 = vpop.f32.mrf.mxu3 }
 0x187   : > { %v1054_v18 = vadd.f32 %v1037_v48, %v982_v59  ;;  %1686 = vmatmul.msk.bf16.gmra.mxu3 %vm369_vm0, %v1972_v7  ;;  %v983_v26 = vadd.f32 %v967_v39, %v913_v16  ;;  %v841_v7 = vadd.f32 %v2234_v8, %v2226_v63 }
 0x189   : > { %v1114_v34 = vadd.f32 %v1097_v56, %v1054_v18 }
 0x18c   : > { %v2255_v52 = vpop.f32.mrf.mxu1 }
 0x18e   : > { %v970_v1 = vpop.f32.mrf.mxu2  ;;  %v1039_v41 = vpop.f32.mrf.mxu3 }
 0x18f   : > { %v2259_v11 = vadd.f32 %v970_v1, %v914_v38  ;;  %v1055_v33 = vadd.f32 %v1039_v41, %v983_v26 }
 0x191   : > { %v1115_v32 = vadd.f32 %v1099_v13, %v1055_v33 }
 0x194   : > { %v905_v12 = vpop.f32.mrf.mxu1 }
 0x195   : > { %v916_v17 = vadd.f32 %v905_v12, %v842_v20  ;;  %v915_v12 = vadd.f32 %v2255_v52, %v841_v7 }
 0x196   : > { %v2261_v30 = vpop.f32.mrf.mxu2  ;;  %v1042_v28 = vpop.f32.mrf.mxu3 }
 0x197   : > { %v985_v55 = vadd.f32 %v2261_v30, %v915_v12  ;;  %v843_v30 = vadd.f32 %v2253_v60, %v2239_v21 }
 0x19c   : > { %v2263_v40 = vpop.f32.mrf.mxu1 }
 0x19e   : > { %v975_v42 = vpop.f32.mrf.mxu2  ;;  %v1044_v1 = vpop.f32.mrf.mxu3 }
 0x19f   : > { %v2267_v43 = vadd.f32 %v975_v42, %v916_v17  ;;  %v1056_v17 = vadd.f32 %v1042_v28, %v2259_v11  ;;  %v1104_v42 = vpop.f32.mrf.mxu0  ;;  %v1057_v48 = vadd.f32 %v1044_v1, %v985_v55 }
 0x1a1   : > { %v1116_v50 = vadd.f32 %v1102_v54, %v1056_v17  ;;  %v1117_v8 = vadd.f32 %v1104_v42, %v1057_v48 }
 0x1a4   : > { %v1150_v15 = vpop.f32.mrf.mxu1 }
 0x1a5   : > { %v1170_v62 = vadd.f32 %v1150_v15, %v1112_v61 }
 0x1a6   : > { %v2269_v45 = vpop.f32.mrf.mxu2  ;;  %v1047_v63 = vpop.f32.mrf.mxu3 }
 0x1a7   : > { %v1107_v56 = vpop.f32.mrf.mxu0 }
 0x1ac   : > { %v1152_v53 = vpop.f32.mrf.mxu1 }
 0x1ad   : > { %v1171_v2 = vadd.f32 %v1152_v53, %v1113_v0  ;;  %v1058_v0 = vadd.f32 %v1047_v63, %v2267_v43 }
 0x1ae   : > { %v1208_v5 = vpop.f32.mrf.mxu2 }
 0x1af   : > { %v1228_v58 = vadd.f32 %v1208_v5, %v1170_v62  ;;  %v917_v62 = vadd.f32 %v2263_v40, %v843_v30  ;;  %v1118_v10 = vadd.f32 %v1107_v56, %v1058_v0  ;;  %v1109_v21 = vpop.f32.mrf.mxu0 }
 0x1b1   : > { %v1240_v9 = vadd.f32 %v2278_v19, %v1228_v58 }
 0x1b3   : > { %v1248_v20 = vmax.f32 %v1240_v9, 0.0 }
 0x1b4   : > { %v1155_v44 = vpop.f32.mrf.mxu1 }
 0x1b5   : > { %v1172_v49 = vadd.f32 %v1155_v44, %v1114_v34  ;;  %v1049_v44 = vpop.f32.mrf.mxu3 }
 0x1b6   : > { %v1210_v3 = vpop.f32.mrf.mxu2 }
 0x1b7   : > { %v1229_v6 = vadd.f32 %v1210_v3, %v1171_v2  ;;  %v987_v2 = vadd.f32 %v2269_v45, %v917_v62 }
 0x1b9   : > { %v1241_v14 = vadd.f32 %v2278_v19, %v1229_v6  ;;  %v1059_v6 = vadd.f32 %v1049_v44, %v987_v2 }
 0x1bb   : > { %v1249_v22 = vmax.f32 %v1241_v14, 0.0  ;;  %v1119_v14 = vadd.f32 %v1109_v21, %v1059_v6 }
 0x1bc   : > { %v1157_v24 = vpop.f32.mrf.mxu1 }
 0x1bd   : > { %v1256_v27 = vpack.c.bf16 %v1249_v22, %v1248_v20  ;;  %v1173_v59 = vadd.f32 %v1157_v24, %v1115_v32 }
 0x1be   : > { %v1213_v31 = vpop.f32.mrf.mxu2 }
 0x1bf   : > { %1695 = vmatmul.msk.bf16.vlgmr.msra.gmra.mxu0 %vm646_vm2, %v1256_v27  ;;  %v1230_v25 = vadd.f32 %v1213_v31, %v1172_v49  ;;  %v1782_v31 = vld [vmem:[%s2363_s7] ss:$0 sm:$0xff] }
 0x1c1   : > { %v1242_v38 = vadd.f32 %v2278_v19, %v1230_v25 }
 0x1c3   : > { %v1250_v29 = vmax.f32 %v1242_v38, 0.0 }
 0x1c4   : > { %v1160_v35 = vpop.f32.mrf.mxu1 }
 0x1c5   : > { %v1174_v23 = vadd.f32 %v1160_v35, %v1116_v50 }
 0x1c6   : > { %v1215_v37 = vpop.f32.mrf.mxu2 }
 0x1c7   : > { %v1231_v46 = vadd.f32 %v1215_v37, %v1173_v59 }
 0x1c9   : > { %v1243_v39 = vadd.f32 %v2278_v19, %v1231_v46 }
 0x1cb   : > { %v1251_v36 = vmax.f32 %v1243_v39, 0.0 }
 0x1cc   : > { %v1162_v4 = vpop.f32.mrf.mxu1 }
 0x1cd   : > { %v1257_v15 = vpack.c.bf16 %v1251_v36, %v1250_v29  ;;  %v1175_v51 = vadd.f32 %v1162_v4, %v1117_v8 }
 0x1ce   : > { %v1218_v47 = vpop.f32.mrf.mxu2 }
 0x1cf   : > { %1696 = vmatmul.msk.bf16.gmra.mxu0 %vm646_vm2, %v1257_v15  ;;  %v1232_v53 = vadd.f32 %v1218_v47, %v1174_v23 }
 0x1d1   : > { %v1244_v11 = vadd.f32 %v2278_v19, %v1232_v53 }
 0x1d3   : > { %v1252_v58 = vmax.f32 %v1244_v11, 0.0 }
 0x1d4   : > { %v1165_v57 = vpop.f32.mrf.mxu1 }
 0x1d5   : > { %v1176_v13 = vadd.f32 %v1165_v57, %v1118_v10 }
 0x1d6   : > { %v1220_v52 = vpop.f32.mrf.mxu2 }
 0x1d7   : > { %v1233_v5 = vadd.f32 %v1220_v52, %v1175_v51 }
 0x1d9   : > { %v1245_v61 = vadd.f32 %v2278_v19, %v1233_v5 }
 0x1da   : > { %v1305_v27 = vpop.f32.mrf.mxu3 }
 0x1db   : > { %v1253_v41 = vmax.f32 %v1245_v61, 0.0 }
 0x1dc   : > { %v1167_v60 = vpop.f32.mrf.mxu1 }
 0x1dd   : > { %v1258_v3 = vpack.c.bf16 %v1253_v41, %v1252_v58  ;;  %v1177_v16 = vadd.f32 %v1167_v60, %v1119_v14 }
 0x1de   : > { %v1223_v9 = vpop.f32.mrf.mxu2 }
 0x1df   : > { %1697 = vmatmul.msk.bf16.gmra.mxu0 %vm646_vm2, %v1258_v3  ;;  %v1234_v40 = vadd.f32 %v1223_v9, %v1176_v13 }
 0x1e1   : > { %v1246_v18 = vadd.f32 %v2278_v19, %v1234_v40 }
 0x1e2   : > { %v1307_v28 = vpop.f32.mrf.mxu3 }
 0x1e3   : > { %v1254_v22 = vmax.f32 %v1246_v18, 0.0 }
 0x1e6   : > { %v1225_v43 = vpop.f32.mrf.mxu2 }
 0x1e7   : > { %v1235_v20 = vadd.f32 %v1225_v43, %v1177_v16 }
 0x1e9   : > { %v1247_v45 = vadd.f32 %v2278_v19, %v1235_v20 }
 0x1ea   : > { %v1310_v32 = vpop.f32.mrf.mxu3 }
 0x1eb   : > { %v1255_v24 = vmax.f32 %v1247_v45, 0.0 }
 0x1ed   : > { %v1259_v26 = vpack.c.bf16 %v1255_v24, %v1254_v22 }
 0x1ef   : > { %1698 = vmatmul.msk.bf16.gmra.mxu0 %vm646_vm2, %v1259_v26 }
 0x1f2   : > { %v1312_v37 = vpop.f32.mrf.mxu3 }
 0x1fa   : > { %v1315_v17 = vpop.f32.mrf.mxu3 }
 0x202   : > { %v1317_v4 = vpop.f32.mrf.mxu3 }
 0x20a   : > { %v1320_v8 = vpop.f32.mrf.mxu3 }
 0x212   : > { %v1322_v5 = vpop.f32.mrf.mxu3 }
 0x23c   : > { %v1358_v33 = vpop.f32.mrf.mxu0 }
 0x23d   : > { %v1359_v34 = vadd.f32 %v1358_v33, %v1305_v27 }
 0x23f   : > { %v1382_v49 = vadd.f32 %v1782_v31, %v1359_v34 }
 0x241   : > { %v1390_v54 = vmax.f32 %v1382_v49, 0.0 }
 0x243   : > { %1398 = vst [vmem:[%s2312_s21] sm:$0xff] %v1390_v54 }
 0x244   : > { %v1360_v19 = vpop.f32.mrf.mxu0 }
 0x245   : > { %v1361_v25 = vadd.f32 %v1360_v19, %v1307_v28 }
 0x247   : > { %v1383_v35 = vadd.f32 %v1782_v31, %v1361_v25 }
 0x249   : > { %v1391_v59 = vmax.f32 %v1383_v35, 0.0 }
 0x24b   : > { %1399 = vst [vmem:[%s2312_s21 + $0x8] sm:$0xff] %v1391_v59 }
 0x24c   : > { %v1363_v38 = vpop.f32.mrf.mxu0 }
 0x24d   : > { %v1364_v46 = vadd.f32 %v1363_v38, %v1310_v32 }
 0x24f   : > { %v1384_v1 = vadd.f32 %v1782_v31, %v1364_v46 }
 0x251   : > { %v1392_v7 = vmax.f32 %v1384_v1, 0.0 }
 0x253   : > { %1400 = vst [vmem:[%s2312_s21 + $0x10] sm:$0xff] %v1392_v7 }
 0x254   : > { %v1365_v39 = vpop.f32.mrf.mxu0 }
 0x255   : > { %v1366_v12 = vadd.f32 %v1365_v39, %v1312_v37 }
 0x257   : > { %v1385_v29 = vadd.f32 %v1782_v31, %v1366_v12 }
 0x259   : > { %v1393_v36 = vmax.f32 %v1385_v29, 0.0 }
 0x25b   : > { %1401 = vst [vmem:[%s2312_s21 + $0x18] sm:$0xff] %v1393_v36 }
 0x25c   : > { %v1368_v42 = vpop.f32.mrf.mxu0 }
 0x25d   : > { %v1369_v55 = vadd.f32 %v1368_v42, %v1315_v17 }
 0x25f   : > { %v1386_v15 = vadd.f32 %v1782_v31, %v1369_v55 }
 0x261   : > { %v1394_v47 = vmax.f32 %v1386_v15, 0.0 }
 0x263   : > { %1402 = vst [vmem:[%s2312_s21 + $0x20] sm:$0xff] %v1394_v47 }
 0x264   : > { %v1370_v48 = vpop.f32.mrf.mxu0 }
 0x265   : > { %v1371_v50 = vadd.f32 %v1370_v48, %v1317_v4 }
 0x267   : > { %v1387_v23 = vadd.f32 %v1782_v31, %v1371_v50 }
 0x269   : > { %v1395_v63 = vmax.f32 %v1387_v23, 0.0 }
 0x26b   : > { %1403 = vst [vmem:[%s2312_s21 + $0x28] sm:$0xff] %v1395_v63 }
 0x26c   : > { %v1373_v53 = vpop.f32.mrf.mxu0 }
 0x26d   : > { %v1374_v51 = vadd.f32 %v1373_v53, %v1320_v8 }
 0x26f   : > { %v1388_v52 = vadd.f32 %v1782_v31, %v1374_v51 }
 0x271   : > { %v1396_v11 = vmax.f32 %v1388_v52, 0.0 }
 0x273   : > { %1404 = vst [vmem:[%s2312_s21 + $0x30] sm:$0xff] %v1396_v11 }
 0x274   : > { %v1375_v56 = vpop.f32.mrf.mxu0 }
 0x275   : > { %v1376_v57 = vadd.f32 %v1375_v56, %v1322_v5 }
 0x277   : > { %v1389_v30 = vadd.f32 %v1782_v31, %v1376_v57 }
 0x279   : > { %v1397_v61 = vmax.f32 %v1389_v30, 0.0 }
 0x27b   : > { %1405 = vst [vmem:[%s2312_s21 + $0x38] sm:$0xff] %v1397_v61 }
 0x27c   : > { %1810 = shalt.err (!%p1807_p3)
}
 0x27d   : > { %s1848_s17 = smov 128   ;;  %s1849_s21 = smov 8  }
 0x27e   : > { %1738 = dma.vmem_to_hbm [thread:$0]  (%p1933_p5), %s1420_s26, 1024, %s1422_s10, %s1407_s12, %s1848_s17, %s1848_s17, %s1849_s21  }
 0x27f PF: > { %p1744_p4 = scmp.ge.s32.totalorder %s1845_s30, 2  ;;  %s1436_s24 = sand.u32 1, %s1833_s27  }
 0x280   : > { %s1437_s25 = scalar_lea.sflag [#allocation3], %s1436_s24 }
 0x281   : > { %p1741_p7 = pnand %p1744_p4, %p1937_p6 }
 0x283   : > { %p1742_p8 = pneg %p1741_p7 }
 0x285   : > { %1828 = dma.done.wait (%p1742_p8), %s1437_s25, 1024  }
 0x286   : > { %1830 = vsyncadd (%p1742_p8), %s1437_s25, 4294966272  ;;  %p18_p9 = scmp.ge.s32.totalorder %s1920_s11, 4   ;;  %s2371_s27 = smov %s1837_s28 }
 0x287   : > { %s2372_s28 = smov %s1841_s29  ;;  %s2373_s29 = smov %s1931_s14 }
 0x288   : > { %s2374_s30 = smov %s1920_s11  ;;  %20 = sbr.rel (!%p18_p9) target bundleno = 3 (0x3), region = 95 }
 0x28d   :  { %1443 = vsyncpa [#allocation3], 1 }
 0x28e   :  { %1445 = vsyncpa [#allocation3 + $0x1], 1 }

</bundles_post_ra>
